<compile_context>
chip_gen: v7x
topology: tpu7x:2x2x1
jax: 0.10.0
libtpu: 0.0.40
codegen_flags: <defaults>
</compile_context>

<pallas_src>
import jax
import jax.numpy as jnp
from jax.experimental import pallas as pl
from jax.experimental.pallas import tpu as pltpu

HEAD_ROWS = 8  # sublane-padded head: rows 0/1 are linear3/linear4, rows 2..7 padding


def actor_kernel(x_ref, w1_ref, w2_ref, w34_ref, c_ref, o_ref):
    """One row-block of the Actor MLP. All weights/consts are VMEM-resident."""
    H = w1_ref.shape[1]
    x = x_ref[...]                                     # (TB, n_obs) f32

    # Packed constants: rows 0/1 of the first H lanes are b1/b2; the last three
    # lanes are (8,1) columns [b34 | scale | shift] for the transposed head.
    b1 = c_ref[0:1, 0:H]                               # (1, H)
    b2 = c_ref[1:2, 0:H]                               # (1, H)
    b34 = c_ref[:, H:H + 1]                            # (8, 1)
    scale = c_ref[:, H + 1:H + 2]                      # (8, 1)
    shift = c_ref[:, H + 2:H + 3]                      # (8, 1)

    # linear1 + relu, linear2 + relu (rows independent).
    h1 = jnp.dot(x, w1_ref[...], preferred_element_type=jnp.float32) + b1
    h1 = jnp.maximum(h1, 0.0)
    h2 = jnp.dot(h1, w2_ref[...], preferred_element_type=jnp.float32) + b2
    h2 = jnp.maximum(h2, 0.0)                          # (TB, H)

    # Fused, transposed head: (8, H) contracted with (TB, H) over H -> (8, TB).
    # Lane dim is TB (multiple of 128 for batched calls) -> lane-dense output.
    z = jax.lax.dot_general(
        w34_ref[...], h2, (((1,), (1,)), ((), ())),
        preferred_element_type=jnp.float32) + b34      # (8, TB)

    # Row 0: 0.5*tanh+0.5 (linear3 path); row 1: tanh (linear4 path); rows 2..7 pad.
    o_ref[...] = jnp.tanh(z) * scale + shift


def _round_up(x, m):
    return (x + m - 1) // m * m


def _select_tb(B, block_rows):
    """Row-block size = lane width of the transposed (8, TB) output tile."""
    if B <= 128:
        return B  # single full-extent block; no padding anywhere
    # Lane-dense blocks (multiple of 128 -> unmasked vst), at least two blocks so
    # both v7x TensorCores get work, >=256 rows to fill the v6e/v7x MXU, capped
    # at block_rows to bound VMEM / keep the grid pipelined.
    half = _round_up(pl.cdiv(B, 2), 128)
    tb = min(block_rows, half)
    tb = max(tb, 256 if B >= 512 else 128)
    return tb


def prepare_actor_params(raw):
    """One-time packing of raw Linear params into kernel-friendly buffers.

    NOTE: weights are stored (in, out); transpose PyTorch's (out, in) Linear
    weights before calling this.
    """
    H = raw["w1"].shape[1]

    # Fused head as ROWS of an (8, H) matrix: row 0 = linear3, row 1 = linear4.
    w34r = jnp.zeros((HEAD_ROWS, H), jnp.float32)
    w34r = w34r.at[0, :].set(raw["w3"][:, 0])
    w34r = w34r.at[1, :].set(raw["w4"][:, 0])

    # Packed constants buffer (8, H+3):
    #   [0, :H] = b1, [1, :H] = b2,
    #   [:, H]   = head bias column  [b3, b4, 0, ...]
    #   [:, H+1] = head scale column [0.5, 1, 0, ...]
    #   [:, H+2] = head shift column [0.5, 0, 0, ...]
    consts = jnp.zeros((HEAD_ROWS, H + 3), jnp.float32)
    consts = consts.at[0, :H].set(raw["b1"][0])
    consts = consts.at[1, :H].set(raw["b2"][0])
    consts = consts.at[0, H].set(raw["b3"][0, 0])
    consts = consts.at[1, H].set(raw["b4"][0, 0])
    consts = consts.at[0, H + 1].set(0.5)
    consts = consts.at[1, H + 1].set(1.0)
    consts = consts.at[0, H + 2].set(0.5)

    return {"w1": raw["w1"], "w2": raw["w2"], "w34r": w34r, "consts": consts}


def actor_forward(state, params, *, block_rows=512):
    """state: (B, n_obs) f32 -> (B, 2) (squeezed to (2,) if B == 1)."""
    B, n_obs = state.shape
    w1, w2, w34r, consts = params["w1"], params["w2"], params["w34r"], params["consts"]
    H = w1.shape[1]
    C = consts.shape[1]

    tb = _select_tb(B, block_rows)
    nblk = pl.cdiv(B, tb)
    b_out = nblk * tb  # output lane extent (tail columns past B are sliced away)

    cost = pl.CostEstimate(
        flops=2 * B * (n_obs * H + H * H + H * HEAD_ROWS),
        transcendentals=HEAD_ROWS * b_out,
        bytes_accessed=4 * (B * n_obs + n_obs * H + H * H
                            + HEAD_ROWS * H + HEAD_ROWS * C + HEAD_ROWS * b_out),
    )

    # Deeper pipelining on the streamed input when there are enough blocks to
    # hide the DMA behind the tiny per-block compute.
    state_spec_kwargs = {}
    if nblk >= 3:
        state_spec_kwargs["pipeline_mode"] = pl.Buffered(3)

    out = pl.pallas_call(
        actor_kernel,
        out_shape=jax.ShapeDtypeStruct((HEAD_ROWS, b_out), jnp.float32),
        grid=(nblk,),
        in_specs=[
            pl.BlockSpec((tb, n_obs), lambda i: (i, 0), **state_spec_kwargs),  # state rows
            pl.BlockSpec((n_obs, H), lambda i: (0, 0)),          # w1: resident
            pl.BlockSpec((H, H), lambda i: (0, 0)),              # w2: resident
            pl.BlockSpec((HEAD_ROWS, H), lambda i: (0, 0)),      # fused head rows: resident
            pl.BlockSpec((HEAD_ROWS, C), lambda i: (0, 0)),      # packed consts: resident
        ],
        out_specs=pl.BlockSpec((HEAD_ROWS, tb), lambda i: (0, i)),
        compiler_params=pltpu.CompilerParams(
            dimension_semantics=("parallel",)),
        cost_estimate=cost,
    )(state, w1, w2, w34r, consts)

    result = out[:2, :B].T                              # (B, 2)
    # torch.squeeze(0): drop the leading dim only if it is 1.
    if B == 1:
        result = jnp.squeeze(result, axis=0)
    return result


def init_actor_params(key, n_obs, hidden_size, init_w=0.003):
    """Deterministic synthetic params mirroring the PyTorch init scheme."""
    ks = jax.random.split(key, 8)

    def uniform(k, shape, bound):
        return jax.random.uniform(k, shape, jnp.float32, -bound, bound)

    # nn.Linear default init: U(-1/sqrt(fan_in), 1/sqrt(fan_in))
    b1_bound = 1.0 / (n_obs ** 0.5)
    b2_bound = 1.0 / (hidden_size ** 0.5)

    return {
        # stored as (in, out) so the kernel computes x @ W
        "w1": uniform(ks[0], (n_obs, hidden_size), b1_bound),
        "b1": uniform(ks[1], (1, hidden_size), b1_bound),
        "w2": uniform(ks[2], (hidden_size, hidden_size), b2_bound),
        "b2": uniform(ks[3], (1, hidden_size), b2_bound),
        # linear3 / linear4: explicit uniform(-init_w, init_w)
        "w3": uniform(ks[4], (hidden_size, 1), init_w),
        "b3": uniform(ks[5], (1, 1), init_w),
        "w4": uniform(ks[6], (hidden_size, 1), init_w),
        "b4": uniform(ks[7], (1, 1), init_w),
    }


if __name__ == "__main__":
    n_obs = 16
    hidden_size = 32

    key = jax.random.PRNGKey(0)
    pkey, xkey_small, xkey_mid, xkey_big = jax.random.split(key, 4)
    raw = init_actor_params(pkey, n_obs, hidden_size)
    params = prepare_actor_params(raw)

    def reference(x):
        h1 = jnp.maximum(x @ raw["w1"] + raw["b1"], 0.0)
        h2 = jnp.maximum(h1 @ raw["w2"] + raw["b2"], 0.0)
        x1 = 0.5 * jnp.tanh(h2 @ raw["w3"] + raw["b3"]) + 0.5
        x2 = jnp.tanh(h2 @ raw["w4"] + raw["b4"])
        return jnp.concatenate([x1, x2], axis=1)

    # Small batch (module-consistent shapes): single full-extent block.
    x_small = jax.random.normal(xkey_small, (2, n_obs), dtype=jnp.float32)
    out_small = jax.block_until_ready(actor_forward(x_small, params))
    assert out_small.shape == (2, 2)
    assert jnp.allclose(out_small, reference(x_small), atol=1e-4), "small-batch mismatch"

    # B == 1 path exercises torch's squeeze(0) semantics.
    out_one = jax.block_until_ready(actor_forward(x_small[:1], params))
    assert out_one.shape == (2,)
    assert jnp.allclose(out_one, reference(x_small[:1])[0], atol=1e-4), "B=1 mismatch"

    # Non-multiple batch: 2 blocks of 512 rows, partial tail block (no input pad).
    x_mid = jax.random.normal(xkey_mid, (1000, n_obs), dtype=jnp.float32)
    out_mid = jax.block_until_ready(actor_forward(x_mid, params))
    assert out_mid.shape == (1000, 2)
    assert jnp.allclose(out_mid, reference(x_mid), atol=1e-4), "partial-block mismatch"

    # Larger batch: 4 blocks of 512 rows, Buffered(3) input pipelining active.
    x_big = jax.random.normal(xkey_big, (2048, n_obs), dtype=jnp.float32)
    out_big = jax.block_until_ready(actor_forward(x_big, params))
    assert out_big.shape == (2048, 2)
    assert jnp.allclose(out_big, reference(x_big), atol=1e-4), "large-batch mismatch"

    print("KERNEL_OK")
</pallas_src>

<mosaic_0001>
module attributes {stable_mosaic.version = 11 : i64} {
  func.func @actor_kernel(%arg0: i32, %arg1: memref<2x16xf32, #tpu.memory_space<vmem>>, %arg2: memref<16x32xf32, #tpu.memory_space<vmem>>, %arg3: memref<32x32xf32, #tpu.memory_space<vmem>>, %arg4: memref<8x32xf32, #tpu.memory_space<vmem>>, %arg5: memref<8x35xf32, #tpu.memory_space<vmem>>, %arg6: memref<8x2xf32, #tpu.memory_space<vmem>>) attributes {dimension_semantics = [#tpu.dimension_semantics<parallel>], iteration_bounds = array<i64: 1>, scalar_prefetch = 0 : i64, scratch_operands = 0 : i64, tpu.core_type = #tpu.core_type<tc>, window_params = [{transform_indices = @transform_0, window_bounds = array<i64: 2, 16>}, {pipeline_mode = #tpu.pipeline_mode<synchronous>, transform_indices = @transform_1, window_bounds = array<i64: 16, 32>}, {pipeline_mode = #tpu.pipeline_mode<synchronous>, transform_indices = @transform_2, window_bounds = array<i64: 32, 32>}, {pipeline_mode = #tpu.pipeline_mode<synchronous>, transform_indices = @transform_3, window_bounds = array<i64: 8, 32>}, {pipeline_mode = #tpu.pipeline_mode<synchronous>, transform_indices = @transform_4, window_bounds = array<i64: 8, 35>}, {transform_indices = @transform_5, window_bounds = array<i64: 8, 2>}]} {
    %c0 = arith.constant 0 : index
    %c0_0 = arith.constant 0 : index
    %0 = vector.load %arg1[%c0, %c0_0] : memref<2x16xf32, #tpu.memory_space<vmem>>, vector<2x16xf32>
    %c0_1 = arith.constant 0 : index
    %c0_2 = arith.constant 0 : index
    %1 = vector.load %arg5[%c0_1, %c0_2] : memref<8x35xf32, #tpu.memory_space<vmem>>, vector<1x32xf32>
    %c1 = arith.constant 1 : index
    %c0_3 = arith.constant 0 : index
    %2 = vector.load %arg5[%c1, %c0_3] : memref<8x35xf32, #tpu.memory_space<vmem>>, vector<1x32xf32>
    %c0_4 = arith.constant 0 : index
    %c32 = arith.constant 32 : index
    %3 = vector.load %arg5[%c0_4, %c32] : memref<8x35xf32, #tpu.memory_space<vmem>>, vector<8x1xf32>
    %c0_5 = arith.constant 0 : index
    %c33 = arith.constant 33 : index
    %4 = vector.load %arg5[%c0_5, %c33] : memref<8x35xf32, #tpu.memory_space<vmem>>, vector<8x1xf32>
    %c0_6 = arith.constant 0 : index
    %c34 = arith.constant 34 : index
    %5 = vector.load %arg5[%c0_6, %c34] : memref<8x35xf32, #tpu.memory_space<vmem>>, vector<8x1xf32>
    %c0_7 = arith.constant 0 : index
    %c0_8 = arith.constant 0 : index
    %6 = vector.load %arg2[%c0_7, %c0_8] : memref<16x32xf32, #tpu.memory_space<vmem>>, vector<16x32xf32>
    %cst = arith.constant dense<0.000000e+00> : vector<2x32xf32>
    %7 = tpu.matmul %0, %6, %cst {dimension_numbers = #tpu.dot_dimension_numbers<[1], [0], [0], [1], [0, 0, 1, 1], [], []>} : vector<2x16xf32>, vector<16x32xf32>, vector<2x32xf32> -> vector<2x32xf32>
    %8 = vector.broadcast %1 : vector<1x32xf32> to vector<2x32xf32>
    %9 = arith.addf %7, %8 : vector<2x32xf32>
    %cst_9 = arith.constant 0.000000e+00 : f32
    %10 = vector.broadcast %cst_9 : f32 to vector<2x32xf32>
    %11 = arith.maximumf %9, %10 : vector<2x32xf32>
    %c0_10 = arith.constant 0 : index
    %c0_11 = arith.constant 0 : index
    %12 = vector.load %arg3[%c0_10, %c0_11] : memref<32x32xf32, #tpu.memory_space<vmem>>, vector<32x32xf32>
    %cst_12 = arith.constant dense<0.000000e+00> : vector<2x32xf32>
    %13 = tpu.matmul %11, %12, %cst_12 {dimension_numbers = #tpu.dot_dimension_numbers<[1], [0], [0], [1], [0, 0, 1, 1], [], []>} : vector<2x32xf32>, vector<32x32xf32>, vector<2x32xf32> -> vector<2x32xf32>
    %14 = vector.broadcast %2 : vector<1x32xf32> to vector<2x32xf32>
    %15 = arith.addf %13, %14 : vector<2x32xf32>
    %cst_13 = arith.constant 0.000000e+00 : f32
    %16 = vector.broadcast %cst_13 : f32 to vector<2x32xf32>
    %17 = arith.maximumf %15, %16 : vector<2x32xf32>
    %c0_14 = arith.constant 0 : index
    %c0_15 = arith.constant 0 : index
    %18 = vector.load %arg4[%c0_14, %c0_15] : memref<8x32xf32, #tpu.memory_space<vmem>>, vector<8x32xf32>
    %cst_16 = arith.constant dense<0.000000e+00> : vector<8x2xf32>
    %19 = tpu.matmul %18, %17, %cst_16 {dimension_numbers = #tpu.dot_dimension_numbers<[1], [1], [0], [0], [0, 0, 1, 0], [], []>} : vector<8x32xf32>, vector<2x32xf32>, vector<8x2xf32> -> vector<8x2xf32>
    %20 = vector.broadcast %3 : vector<8x1xf32> to vector<8x2xf32>
    %21 = arith.addf %19, %20 : vector<8x2xf32>
    %22 = math.tanh %21 : vector<8x2xf32>
    %23 = vector.broadcast %4 : vector<8x1xf32> to vector<8x2xf32>
    %24 = arith.mulf %22, %23 : vector<8x2xf32>
    %25 = vector.broadcast %5 : vector<8x1xf32> to vector<8x2xf32>
    %26 = arith.addf %24, %25 : vector<8x2xf32>
    %c0_17 = arith.constant 0 : index
    %c0_18 = arith.constant 0 : index
    %27 = vector.load %arg6[%c0_17, %c0_18] : memref<8x2xf32, #tpu.memory_space<vmem>>, vector<8x2xf32>
    tpu.vector_store %arg6[%c0_17, %c0_18], %26 {strides = array<i32>} : memref<8x2xf32, #tpu.memory_space<vmem>>, vector<8x2xf32>,
    return
  }
  func.func @transform_0(%arg0: i32) -> (i32, i32) {
    %c0_i32 = arith.constant 0 : i32
    %c0_i32_0 = arith.constant 0 : i32
    return %arg0, %c0_i32 : i32, i32
  }
  func.func @transform_1(%arg0: i32) -> (i32, i32) {
    %c0_i32 = arith.constant 0 : i32
    %c0_i32_0 = arith.constant 0 : i32
    %c0_i32_1 = arith.constant 0 : i32
    return %c0_i32, %c0_i32_0 : i32, i32
  }
  func.func @transform_2(%arg0: i32) -> (i32, i32) {
    %c0_i32 = arith.constant 0 : i32
    %c0_i32_0 = arith.constant 0 : i32
    %c0_i32_1 = arith.constant 0 : i32
    return %c0_i32, %c0_i32_0 : i32, i32
  }
  func.func @transform_3(%arg0: i32) -> (i32, i32) {
    %c0_i32 = arith.constant 0 : i32
    %c0_i32_0 = arith.constant 0 : i32
    %c0_i32_1 = arith.constant 0 : i32
    return %c0_i32, %c0_i32_0 : i32, i32
  }
  func.func @transform_4(%arg0: i32) -> (i32, i32) {
    %c0_i32 = arith.constant 0 : i32
    %c0_i32_0 = arith.constant 0 : i32
    %c0_i32_1 = arith.constant 0 : i32
    return %c0_i32, %c0_i32_0 : i32, i32
  }
  func.func @transform_5(%arg0: i32) -> (i32, i32) {
    %c0_i32 = arith.constant 0 : i32
    %c0_i32_0 = arith.constant 0 : i32
    return %c0_i32, %arg0 : i32, i32
  }
}

</mosaic_0001>

<bundles_post_ra>
// kernel: tpu_custom_call.1
= control target key start
LH: loop header
LB: loop body
LE: loop exit
PB: predicated region body
PF: predicated region fallthrough
CT: control target
= control target key end

     0   :  { %10 = vsyncpa [#allocation3], 0  ;;  %s609_s0 = inlined_call_operand.hbm [shape: f32[2,16], index: 0, kind: input, shape index: {}]   ;;  %s610_s1 = inlined_call_operand.hbm [shape: f32[16,32], index: 1, kind: input, shape index: {}]   ;;  %s611_s2 = inlined_call_operand.hbm [shape: f32[32,32], index: 2, kind: input, shape index: {}]   ;;  %s612_s3 = inlined_call_operand.vmem [shape: f32[8,32], index: 3, kind: input, shape index: {}]   ;;  %s613_s4 = inlined_call_operand.hbm [shape: f32[8,35], index: 4, kind: input, shape index: {}]   ;;  %s614_s5 = inlined_call_operand.vmem [shape: f32[8,2], index: 5, kind: output, shape index: {}]  }
   0x1   :  { %11 = vsyncpa [#allocation5], 0 }
   0x2   :  { %12 = vsyncpa [#allocation8], 0  ;;  %s501_s18 = smov [#allocation4]   ;;  %s407_s22 = scalar_lea.hbm %s610_s1, 256 }
   0x3   :  { %s28_s19 = sshll.u32 %s501_s18, 4  ;;  %p408_p0 = scmp.ne.s32.totalorder %s610_s1, %s407_s22  ;;  %s29_s19 = int_to_ptr.vmem [resolvable:$true] %s28_s19 }
   0x4   :  { %p411_p1 = scmp.lt.u32.totalorder %s407_s22, %s610_s1 }
   0x6   :  { %p413_p2 = pnand %p411_p1, %p408_p0 }
   0x8   :  { %416 = shalt.err (!%p413_p2)
}
   0x9   :  { %s417_s27 = scalar_lea.vmem %s29_s19, 256  ;;  %p422_p4 = scmp.lt.s32.totalorder %s29_s19, %s29_s19 }
   0xa   :  { %p418_p3 = scmp.ne.s32.totalorder %s29_s19, %s417_s27  ;;  %p423_p5 = scmp.lt.s32.totalorder %s417_s27, %s417_s27 }
   0xc   :  { %p424_p6 = por %p423_p5, %p422_p4 }
   0xe   :  { %p425_p7 = pnand %p424_p6, %p418_p3 }
  0x10   :  { %428 = shalt.err (!%p425_p7)
}
  0x11   :  { %s502_s28 = smov 128   ;;  %s503_s29 = smov 8  }
  0x12   :  { %34 = dma.hbm_to_vmem [thread:$0]  %s610_s1, 256, %s29_s19, [#allocation5], %s502_s28, %s502_s28, %s503_s29  }
  0x13   :  { %s504_s7 = smov [#allocation2]   ;;  %s505_s9 = smov [#allocation6]  }
  0x14   :  { %s19_s8 = sshll.u32 %s504_s7, 4  ;;  %s40_s10 = sshll.u32 %s505_s9, 4  ;;  %s20_s8 = int_to_ptr.vmem [resolvable:$true] %s19_s8  ;;  %s41_s10 = int_to_ptr.vmem [resolvable:$true] %s40_s10 }
  0x15   :  { %s429_s13 = scalar_lea.hbm %s609_s0, 32 }
  0x16   :  { %p430_p8 = scmp.ne.s32.totalorder %s609_s0, %s429_s13  ;;  %p433_p9 = scmp.lt.u32.totalorder %s429_s13, %s609_s0 }
  0x18   :  { %p435_p10 = pnand %p433_p9, %p430_p8 }
  0x1a   :  { %438 = shalt.err (!%p435_p10)
}
  0x1b   :  { %s439_s1 = scalar_lea.vmem %s20_s8, 32  ;;  %p444_p12 = scmp.lt.s32.totalorder %s20_s8, %s20_s8 }
  0x1c   :  { %p440_p11 = scmp.ne.s32.totalorder %s20_s8, %s439_s1  ;;  %p445_p13 = scmp.lt.s32.totalorder %s439_s1, %s439_s1 }
  0x1e   :  { %p446_p0 = por %p445_p13, %p444_p12 }
  0x20   :  { %p447_p1 = pnand %p446_p0, %p440_p11 }
  0x22   :  { %450 = shalt.err (!%p447_p1)
}
  0x23   :  { %22 = dma.hbm_to_vmem [thread:$0]  %s609_s0, 32, %s20_s8, [#allocation3]  }
  0x24   :  { %s451_s22 = scalar_lea.hbm %s611_s2, 512 }
  0x25   :  { %p452_p2 = scmp.ne.s32.totalorder %s611_s2, %s451_s22  ;;  %p455_p3 = scmp.lt.u32.totalorder %s451_s22, %s611_s2 }
  0x27   :  { %p457_p4 = pnand %p455_p3, %p452_p2 }
  0x29   :  { %460 = shalt.err (!%p457_p4)
}
  0x2a   :  { %s461_s27 = scalar_lea.vmem %s41_s10, 512  ;;  %p466_p6 = scmp.lt.s32.totalorder %s41_s10, %s41_s10 }
  0x2b   :  { %p462_p5 = scmp.ne.s32.totalorder %s41_s10, %s461_s27  ;;  %p467_p7 = scmp.lt.s32.totalorder %s461_s27, %s461_s27 }
  0x2d   :  { %p468_p8 = por %p467_p7, %p466_p6 }
  0x2f   :  { %p469_p9 = pnand %p468_p8, %p462_p5 }
  0x31   :  { %472 = shalt.err (!%p469_p9)
}
  0x32   :  { %46 = dma.hbm_to_vmem [thread:$0]  %s611_s2, 512, %s41_s10, [#allocation5], %s502_s28, %s502_s28, %s503_s29  }
  0x33   :  { %s506_s6 = smov [#allocation7]   ;;  %s473_s11 = scalar_lea.hbm %s613_s4, 128 }
  0x34   :  { %s55_s7 = sshll.u32 %s506_s6, 4  ;;  %p474_p10 = scmp.ne.s32.totalorder %s613_s4, %s473_s11  ;;  %s56_s7 = int_to_ptr.vmem [resolvable:$true] %s55_s7 }
  0x35   :  { %p477_p11 = scmp.lt.u32.totalorder %s473_s11, %s613_s4 }
  0x37   :  { %p479_p12 = pnand %p477_p11, %p474_p10 }
  0x39   :  { %482 = shalt.err (!%p479_p12)
}
  0x3a   :  { %s483_s16 = scalar_lea.vmem %s56_s7, 128  ;;  %p488_p0 = scmp.lt.s32.totalorder %s56_s7, %s56_s7 }
  0x3b   :  { %p484_p13 = scmp.ne.s32.totalorder %s56_s7, %s483_s16  ;;  %p489_p1 = scmp.lt.s32.totalorder %s483_s16, %s483_s16 }
  0x3d   :  { %p490_p2 = por %p489_p1, %p488_p0 }
  0x3f   :  { %p491_p3 = pnand %p490_p2, %p484_p13 }
  0x41   :  { %494 = shalt.err (!%p491_p3)
}
  0x42   :  { %58 = dma.hbm_to_vmem [thread:$0]  %s613_s4, 128, %s56_s7, [#allocation8]  }
  0x43   :  { %495 = dma.done.wait [#allocation3], 32  }
  0x44   :  { %496 = vsyncadd [#allocation3], 4294967264 }
  0x45   :  { %497 = dma.done.wait [#allocation5], 768  }
  0x46   :  { %498 = vsyncadd [#allocation5], 4294966528 }
  0x47   :  { %499 = dma.done.wait [#allocation8], 128  }
  0x48   :  { %500 = vsyncadd [#allocation8], 4294967168  ;;  %v507_v0 = vmov 0.0|0.0   ;;  %vm508_vm0 = vmmov 0   ;;  %v509_v1 = vmov 0.0   ;;  %v75_v2 = vld [vmem:[#allocation4] sm:$0xff] }
  0x49   :  { %380 = vmatprep.subr.bf16.mxu0 %v507_v0  ;;  %361 = vmatprep.mubr.msk.f32.mxu0 %vm508_vm0, %v509_v1  ;;  %v76_v3 = vld [vmem:[#allocation4 + $0x8] sm:$0xff]  ;;  %v156_v5 = vld [vmem:[#allocation6] sm:$0xff]  ;;  %v157_v6 = vld [vmem:[#allocation6 + $0x8] sm:$0xff]  ;;  %vm81_vm1 = vcmask 130048   ;;  %vm164_vm2 = vcmask 261120   ;;  %v510_v18 = vmov 32  }
  0x4a   :  { %383 = vmatprep.subr.bf16.mxu1 %v507_v0  ;;  %372 = vmatprep.mubr.msk.f32.mxu1 %vm508_vm0, %v509_v1  ;;  %v381_v4 = vpack.c.bf16 %v76_v3, %v75_v2  ;;  %v384_v7 = vpack.c.bf16 %v157_v6, %v156_v5  ;;  %v71_v8 = vld [vmem:[#allocation2] sm:$0x3]  ;;  %v158_v9 = vld [vmem:[#allocation6 + $0x10] sm:$0xff]  ;;  %v159_v10 = vld [vmem:[#allocation6 + $0x18] sm:$0xff]  ;;  %v511_v19 = vmov 34   ;;  %v512_v20 = vmov 33  }
  0x4b   :  { %v387_v11 = vpack.c.bf16 %v159_v10, %v158_v9  ;;  %v341_v12 = vld [vmem:[#allocation7] ss:$0 sm:$0xff]  ;;  %401 = vset.pattern.permute.xlu0 %v510_v18  ;;  %403 = vset.pattern.permute.xlu1 %v511_v19  ;;  %v343_v21 = vld [vmem:[#allocation7 + $0x1] ss:$0 sm:$0xff]  ;;  %v239_v26 = vld [vmem:[%s612_s3] sm:$0xff]  ;;  %vm332_vm3 = vcmask 15360  }
  0x4c   :  { %382 = vmatpush3.bf16.msra.mxu0 %v381_v4  ;;  %385 = vmatpush3.bf16.msra.mxu1 %v384_v7  ;;  %v74_v17 = vld [vmem:[#allocation7] sm:$0xff] }
  0x4d   :  { %375 = vmatprep.subr.mxu0 %v509_v1  ;;  %386 = vmatprep.subr.bf16.mxu1 %v507_v0 }
  0x4e   :  { %242 = vperm.xlu0 %401, %v74_v17   ;;  %328 = vperm.xlu1 %403, %v74_v17  }
  0x4f   :  { %362 = vmatmul.mubr.msk.f32.vlgmr.msra.gmra.mrb[0].mxu0 %vm81_vm1, %v71_v8 }
  0x50   :  { %377 = vmatprep.mubr.msk.f32.mxu0 %vm508_vm0, %v509_v1  ;;  %388 = vmatpush3.bf16.msra.mxu1 %v387_v11 }
  0x52   :  { %402 = vset.pattern.permute.xlu0 %v512_v20 }
  0x53   :  { %323 = vperm.xlu0 %402, %v74_v17  }
  0x57   :  { %404 = vset.pattern.permute.xlu0 %v511_v19 }
  0xcd   :  { %v243_v27 = vpop.permute.xlu0 %242  ;;  %v329_v33 = vpop.permute.xlu1 %328 }
  0xd2   :  { %v324_v31 = vpop.permute.xlu0 %323 }
 0x122   :  { %v151_v13 = vpop.f32.mrb[0].mxu0 }
 0x123   :  { %v152_v14 = vadd.f32 %v341_v12, %v151_v13  ;;  %v363_v15 = vpop.f32.mrb[1].mxu0 }
 0x125   :  { %v155_v16 = vmax.f32 %v152_v14, 0.0 }
 0x127   :  { %373 = vmatmul.mubr.msk.f32.vlgmr.msra.gmra.mrb[0].mxu1 %vm164_vm2, %v155_v16 }
 0x1fa   :  { %v234_v22 = vpop.f32.mrb[0].mxu1 }
 0x1fb   :  { %v235_v23 = vadd.f32 %v343_v21, %v234_v22  ;;  %v374_v24 = vpop.f32.mrb[1].mxu1 }
 0x1fd   :  { %v238_v25 = vmax.f32 %v235_v23, 0.0 }
 0x1ff   :  { %376 = vmatpush3.xpose.msk.msra.mxu0 %vm164_vm2, %v238_v25 }
 0x202   :  { %378 = vmatmul.mubr.msk.f32.vlgmr.msra.gmra.mrb[2].mxu0 %vm164_vm2, %v239_v26 }
 0x2d5   :  { %v317_v28 = vpop.f32.mrb[2].mxu0 }
 0x2d6   :  { %v318_v29 = vadd.f32 %v317_v28, %v243_v27  ;;  %v379_v30 = vpop.f32.mrb[3].mxu0 }
 0x2d8   :  { %405 = vtanh.f32 %v318_v29 }
 0x2e2   :  { %v406_v32 = vpop.eup %405 }
 0x2e3   :  { %v326_v34 = vmul.f32 %v406_v32, %v324_v31 }
 0x2e5   :  { %v331_v35 = vadd.f32 %v329_v33, %v326_v34 }
 0x2e7   :  { %333 = vst.msk [vmem:[%s614_s5] sm:$0xff] %vm332_vm3, %v331_v35 }
 0x2e8   :  { %338 = vsyncpa [#allocation3], 1 }
 0x2e9   :  { %339 = vsyncpa [#allocation5], 1 }
 0x2ea   :  { %340 = vsyncpa [#allocation8], 1 }

</bundles_post_ra>
